<compile_context>
chip_gen: v7x
topology: tpu7x:2x2x1
jax: 0.10.0
libtpu: 0.0.40
codegen_flags: <defaults>
</compile_context>

<pallas_src>
import functools
import math

import jax
import jax.numpy as jnp
from jax import lax
from jax.experimental import pallas as pl
from jax.experimental.pallas import tpu as pltpu

EPS = 1e-5            # nn.BatchNorm2d default eps
CDT = jnp.bfloat16    # inter-layer / matmul operand dtype


# -----------------------------------------------------------------------------
# Fused conv kernel:
#   y = [relu]( (im2col(x) @ W) * scale + bias [+ [relu](res)] )
#   with optional input prologue  x <- [relu]( x * pre_scale + pre_bias )
# -----------------------------------------------------------------------------
def _conv_kernel(*refs, taps, m, relu, pre_affine, pre_relu, has_res, res_relu):
    it = iter(refs)
    x_ref = next(it)          # (L, Cin)          bf16
    w_ref = next(it)          # (k*k*Cin, Cout)   bf16
    sc_ref = next(it)         # (1, Cout)         f32
    bi_ref = next(it)         # (1, Cout)         f32
    psc_ref = pbi_ref = r_ref = None
    if pre_affine:
        psc_ref = next(it)    # (1, Cin) f32
        pbi_ref = next(it)    # (1, Cin) f32
    if has_res:
        r_ref = next(it)      # (M, Cout) bf16
    o_ref = next(it)          # (M, Cout)

    x = x_ref[...]            # bf16, no whole-buffer upcast
    if pre_affine:
        xf = x.astype(jnp.float32) * psc_ref[...] + pbi_ref[...]
        if pre_relu:
            xf = jnp.maximum(xf, 0.0)
        x = xf.astype(CDT)
    elif pre_relu:
        x = jnp.maximum(x, 0)

    # In-VMEM im2col: concatenate the k*k shifted windows along K, one matmul.
    if len(taps) == 1:
        xim = x[taps[0]:taps[0] + m, :]
    else:
        xim = jnp.concatenate([x[s:s + m, :] for s in taps], axis=-1)

    y = jnp.dot(xim, w_ref[...], preferred_element_type=jnp.float32)
    y = y * sc_ref[...] + bi_ref[...]
    if has_res:
        r = r_ref[...].astype(jnp.float32)
        if res_relu:
            r = jnp.maximum(r, 0.0)
        y = y + r
    if relu:
        y = jnp.maximum(y, 0.0)
    o_ref[...] = y.astype(o_ref.dtype)


def pallas_conv(x, wmat, scale, bias, *, k, cout, stride, padding,
                relu=False, residual=None, res_relu=False,
                pre_scale=None, pre_bias=None, pre_relu=False, out_dtype=CDT):
    """Fused Conv2d(+folded BN scale/bias)(+residual)(+ReLU) with optional
    affine/ReLU input prologue.  x: (N,H,W,Cin) -> (N,OH,OW,Cout)."""
    n, h, w_in, cin = x.shape
    oh = (h + 2 * padding - k) // stride + 1
    ow = (w_in + 2 * padding - k) // stride + 1
    xb = x.astype(CDT)   # no-op when the producer already emitted bf16

    if k == 1:
        if stride > 1:
            xb = xb[:, ::stride, ::stride, :]
        xb = xb[:, :oh, :ow, :]
        x_flat = xb.reshape(n, oh * ow, cin)
        wph = ow
        taps = (0,)
    else:
        q = (k - 1) // stride            # max tap offset inside a phase
        hph = oh + q + 1                 # +1 row of slack for row-wrapped reads
        wph = ow + q                     # extended output width (garbage cols dropped)
        hpad, wpad = stride * hph, stride * wph
        pb, pr = hpad - h - padding, wpad - w_in - padding
        assert pb >= 0 and pr >= 0, (pb, pr)
        xp = jnp.pad(xb, ((0, 0), (padding, pb), (padding, pr), (0, 0)))
        if stride == 1:
            x_flat = xp.reshape(n, hph * wph, cin)
        else:
            phases = [xp[:, a::stride, b::stride, :]
                      for a in range(stride) for b in range(stride)]
            x_flat = jnp.stack(phases, axis=1).reshape(
                n, stride * stride * hph * wph, cin)
        taps = tuple(
            ((di % stride) * stride + (dj % stride)) * hph * wph
            + (di // stride) * wph + (dj // stride)
            for di in range(k) for dj in range(k))

    m = oh * wph
    big_l = x_flat.shape[1]

    args = [x_flat, wmat, scale, bias]
    in_specs = [
        pl.BlockSpec((None, big_l, cin), lambda i: (i, 0, 0)),
        pl.BlockSpec((k * k * cin, cout), lambda i: (0, 0)),
        pl.BlockSpec((1, cout), lambda i: (0, 0)),
        pl.BlockSpec((1, cout), lambda i: (0, 0)),
    ]
    pre_affine = pre_scale is not None
    if pre_affine:
        args += [pre_scale, pre_bias]
        in_specs += [pl.BlockSpec((1, cin), lambda i: (0, 0)),
                     pl.BlockSpec((1, cin), lambda i: (0, 0))]
    has_res = residual is not None
    if has_res:
        r = residual.astype(CDT)
        if wph != ow:
            r = jnp.pad(r, ((0, 0), (0, 0), (0, wph - ow), (0, 0)))
        args.append(r.reshape(n, m, cout))
        in_specs.append(pl.BlockSpec((None, m, cout), lambda i: (i, 0, 0)))

    kern = functools.partial(
        _conv_kernel, taps=taps, m=m, relu=relu, pre_affine=pre_affine,
        pre_relu=pre_relu, has_res=has_res, res_relu=res_relu)

    out = pl.pallas_call(
        kern,
        out_shape=jax.ShapeDtypeStruct((n, m, cout), out_dtype),
        grid=(n,),
        in_specs=in_specs,
        out_specs=pl.BlockSpec((None, m, cout), lambda i: (i, 0, 0)),
        compiler_params=pltpu.CompilerParams(dimension_semantics=("parallel",)),
    )(*args)

    out = out.reshape(n, oh, wph, cout)
    if wph != ow:
        out = out[:, :, :ow, :]
    return out


# -----------------------------------------------------------------------------
# Precomputed (folded) conv parameters + call glue
# -----------------------------------------------------------------------------
def fold_bn_arrays(bn, conv_bias=None):
    scale = bn['gamma'] / jnp.sqrt(bn['var'] + EPS)
    bias = bn['beta'] - bn['mean'] * scale
    if conv_bias is not None:
        bias = bias + scale * conv_bias
    return scale, bias


def prep_conv(conv_p, bn_p=None, pre_bn=None):
    w = conv_p['w']
    cout, cin, k, _ = w.shape
    wmat = jnp.transpose(w, (2, 3, 1, 0)).reshape(k * k * cin, cout).astype(CDT)
    if bn_p is not None:
        scale, bias = fold_bn_arrays(bn_p, conv_p['b'])
    else:
        scale = jnp.ones((cout,), jnp.float32)
        bias = conv_p['b'] if conv_p['b'] is not None else jnp.zeros((cout,), jnp.float32)
    d = {'wmat': wmat,
         'scale': scale.reshape(1, cout).astype(jnp.float32),
         'bias': bias.reshape(1, cout).astype(jnp.float32),
         'k': k, 'cin': cin, 'cout': cout}
    if pre_bn is not None:
        psc, pbi = fold_bn_arrays(pre_bn)
        d['pre_scale'] = psc.reshape(1, cin).astype(jnp.float32)
        d['pre_bias'] = pbi.reshape(1, cin).astype(jnp.float32)
    return d


def run_conv(x, cp, *, stride=1, padding=None, relu=False, residual=None,
             res_relu=False, pre_relu=False, out_dtype=CDT):
    k = cp['k']
    if padding is None:
        padding = k // 2
    psc, pbi = cp.get('pre_scale'), cp.get('pre_bias')
    if psc is not None and k > 1 and padding > 0:
        # Correctness: BN(+ReLU) must act BEFORE zero padding, otherwise the pad
        # ring would become relu(pre_bias) instead of 0.  Only the tiny DAPPM
        # process convs hit this path, so the wrapper pass is negligible.
        xf = x.astype(jnp.float32) * psc.reshape(1, 1, 1, -1) + pbi.reshape(1, 1, 1, -1)
        if pre_relu:
            xf = jnp.maximum(xf, 0.0)
        x = xf.astype(CDT)
        psc = pbi = None
        pre_relu = False
    return pallas_conv(x, cp['wmat'], cp['scale'], cp['bias'], k=k, cout=cp['cout'],
                       stride=stride, padding=padding, relu=relu, residual=residual,
                       res_relu=res_relu, pre_scale=psc, pre_bias=pbi,
                       pre_relu=pre_relu, out_dtype=out_dtype)


# -----------------------------------------------------------------------------
# Pool / resize helpers (small XLA glue between kernels)
# -----------------------------------------------------------------------------
def avg_pool(x, k, s, p):
    # matches nn.AvgPool2d(k, s, p), count_include_pad=True (default)
    xf = x.astype(jnp.float32)
    summed = lax.reduce_window(xf, 0.0, lax.add, (1, k, k, 1), (1, s, s, 1),
                               ((0, 0), (p, p), (p, p), (0, 0)))
    return (summed / float(k * k)).astype(x.dtype)


def bilinear_resize(x, out_h, out_w):
    # matches F.interpolate(mode='bilinear', align_corners=False)
    n, h, w, c = x.shape
    if h == out_h and w == out_w:
        return x

    def idx_weights(in_size, out_size):
        scale = in_size / out_size
        dst = jnp.arange(out_size, dtype=jnp.float32)
        src = jnp.clip((dst + 0.5) * scale - 0.5, 0.0, float(in_size - 1))
        i0 = jnp.floor(src).astype(jnp.int32)
        i1 = jnp.minimum(i0 + 1, in_size - 1)
        lam = src - i0.astype(jnp.float32)
        return i0, i1, lam

    r0, r1, wr = idx_weights(h, out_h)
    c0, c1, wc = idx_weights(w, out_w)
    xf = x.astype(jnp.float32)
    top = xf[:, r0, :, :] * (1 - wr)[None, :, None, None] + xf[:, r1, :, :] * wr[None, :, None, None]
    out = top[:, :, c0, :] * (1 - wc)[None, None, :, None] + top[:, :, c1, :] * wc[None, None, :, None]
    return out.astype(x.dtype)


# -----------------------------------------------------------------------------
# Deterministic raw-parameter construction (mirrors the PyTorch module)
# -----------------------------------------------------------------------------
class KeyGen:
    def __init__(self, key):
        self.key = key

    def next(self):
        self.key, sub = jax.random.split(self.key)
        return sub


def init_conv(kg, in_c, out_c, k, bias=False):
    fan = in_c * k * k
    w = jax.random.normal(kg.next(), (out_c, in_c, k, k), jnp.float32) / math.sqrt(fan)
    b = (0.05 * jax.random.normal(kg.next(), (out_c,), jnp.float32)) if bias else None
    return {'w': w, 'b': b, 'k': k}


def init_bn(kg, c):
    return {
        'gamma': 1.0 + 0.1 * jax.random.normal(kg.next(), (c,), jnp.float32),
        'beta': 0.1 * jax.random.normal(kg.next(), (c,), jnp.float32),
        'mean': 0.1 * jax.random.normal(kg.next(), (c,), jnp.float32),
        'var': 1.0 + 0.1 * jnp.abs(jax.random.normal(kg.next(), (c,), jnp.float32)),
    }


def init_basic_block(kg, inplanes, planes, stride, downsample):
    p = {'conv1': init_conv(kg, inplanes, planes, 3), 'bn1': init_bn(kg, planes),
         'conv2': init_conv(kg, planes, planes, 3), 'bn2': init_bn(kg, planes),
         'stride': stride}
    if downsample:
        p['ds_conv'] = init_conv(kg, inplanes, planes, 1)
        p['ds_bn'] = init_bn(kg, planes)
    return p


def init_bottleneck(kg, inplanes, planes, stride, downsample):
    p = {'conv1': init_conv(kg, inplanes, planes, 1), 'bn1': init_bn(kg, planes),
         'conv2': init_conv(kg, planes, planes, 3), 'bn2': init_bn(kg, planes),
         'conv3': init_conv(kg, planes, planes * 2, 1), 'bn3': init_bn(kg, planes * 2),
         'stride': stride}
    if downsample:
        p['ds_conv'] = init_conv(kg, inplanes, planes * 2, 1)
        p['ds_bn'] = init_bn(kg, planes * 2)
    return p


def init_layer(kg, block_type, inplanes, planes, blocks, stride=1):
    exp = 1 if block_type == 'basic' else 2
    default_no_relu = (block_type == 'bottleneck')  # DDRNet Bottleneck default no_relu=True
    init_fn = init_basic_block if block_type == 'basic' else init_bottleneck
    blocks_p = []
    downsample = (stride != 1) or (inplanes != planes * exp)
    blocks_p.append({'p': init_fn(kg, inplanes, planes, stride, downsample),
                     'no_relu': default_no_relu})
    inpl = planes * exp
    for i in range(1, blocks):
        blocks_p.append({'p': init_fn(kg, inpl, planes, 1, False),
                         'no_relu': (i == blocks - 1)})
    return {'type': block_type, 'blocks': blocks_p}


def init_dappm(kg, inplanes, branch, out):
    p = {}
    for name in ['scale0', 'scale1', 'scale2', 'scale3', 'scale4']:
        p[name] = {'bn': init_bn(kg, inplanes), 'conv': init_conv(kg, inplanes, branch, 1)}
    for name in ['process1', 'process2', 'process3', 'process4']:
        p[name] = {'bn': init_bn(kg, branch), 'conv': init_conv(kg, branch, branch, 3)}
    p['compression'] = {'bn': init_bn(kg, branch * 5), 'conv': init_conv(kg, branch * 5, out, 1)}
    p['shortcut'] = {'bn': init_bn(kg, inplanes), 'conv': init_conv(kg, inplanes, out, 1)}
    return p


def init_output(kg, in_c, out_c):
    # TODO(synk): original PINet `Output` head definition not in the excerpt; assuming
    #             Conv3x3+BN+ReLU -> Conv1x1(bias) with matching in/out channels.
    return {'conv1': init_conv(kg, in_c, in_c, 3), 'bn1': init_bn(kg, in_c),
            'conv2': init_conv(kg, in_c, out_c, 1, bias=True)}


def init_model(key, planes=8, spp_planes=16, head_planes=32, feature_size=4,
               layers_cfg=(1, 1, 1, 1)):
    kg = KeyGen(key)
    hr = planes * 2
    P = {}
    P['conv1_a'] = init_conv(kg, 3, planes, 3, bias=True)
    P['bn1_a'] = init_bn(kg, planes)
    P['conv1_b'] = init_conv(kg, planes, planes, 3, bias=True)
    P['bn1_b'] = init_bn(kg, planes)
    P['layer1'] = init_layer(kg, 'basic', planes, planes, layers_cfg[0])  # unused in forward
    P['layer2'] = init_layer(kg, 'basic', planes, planes * 2, layers_cfg[1], stride=2)
    P['layer3'] = init_layer(kg, 'basic', planes * 2, planes * 4, layers_cfg[2], stride=2)
    P['layer4'] = init_layer(kg, 'basic', planes * 4, planes * 8, layers_cfg[3], stride=2)
    P['compression3'] = {'conv': init_conv(kg, planes * 4, hr, 1), 'bn': init_bn(kg, hr)}
    P['compression4'] = {'conv': init_conv(kg, planes * 8, hr, 1), 'bn': init_bn(kg, hr)}
    P['down3'] = {'conv': init_conv(kg, hr, planes * 4, 3), 'bn': init_bn(kg, planes * 4)}
    P['down4_a'] = {'conv': init_conv(kg, hr, planes * 4, 3), 'bn': init_bn(kg, planes * 4)}
    P['down4_b'] = {'conv': init_conv(kg, planes * 4, planes * 8, 3), 'bn': init_bn(kg, planes * 8)}
    P['layer3_'] = init_layer(kg, 'basic', planes * 2, hr, 2)
    P['layer4_'] = init_layer(kg, 'basic', hr, hr, 2)
    P['layer5_'] = init_layer(kg, 'bottleneck', hr, hr, 1)
    P['layer5'] = init_layer(kg, 'bottleneck', planes * 8, planes * 8, 1, stride=2)
    P['spp'] = init_dappm(kg, planes * 16, spp_planes, planes * 4)
    P['out_confidence'] = init_output(kg, head_planes, 1)
    P['out_offset'] = init_output(kg, head_planes, 2)
    P['out_instance'] = init_output(kg, head_planes, feature_size)
    return P


# -----------------------------------------------------------------------------
# One-time parameter preparation (BN folding + weight transpose/cast)
# -----------------------------------------------------------------------------
def prep_layer(lp):
    blocks = []
    for b in lp['blocks']:
        p = b['p']
        e = {'stride': p['stride'], 'no_relu': b['no_relu'],
             'conv1': prep_conv(p['conv1'], p['bn1']),
             'conv2': prep_conv(p['conv2'], p['bn2'])}
        if 'conv3' in p:
            e['conv3'] = prep_conv(p['conv3'], p['bn3'])
        if 'ds_conv' in p:
            e['ds'] = prep_conv(p['ds_conv'], p['ds_bn'])
        blocks.append(e)
    return {'type': lp['type'], 'blocks': blocks}


def prep_convbn(d):   # Conv -> BN (post-BN)
    return prep_conv(d['conv'], d['bn'])


def prep_bnconv(d):   # BN -> ReLU -> Conv (pre-BN, DAPPM style)
    return prep_conv(d['conv'], None, pre_bn=d['bn'])


def prep_output(p):
    return {'conv1': prep_conv(p['conv1'], p['bn1']),
            'conv2': prep_conv(p['conv2'], None)}


def prepare_model(P):
    Q = {}
    Q['conv1_a'] = prep_conv(P['conv1_a'], P['bn1_a'])
    Q['conv1_b'] = prep_conv(P['conv1_b'], P['bn1_b'])
    for name in ['layer2', 'layer3', 'layer4', 'layer3_', 'layer4_', 'layer5_', 'layer5']:
        Q[name] = prep_layer(P[name])
    Q['compression3'] = prep_convbn(P['compression3'])
    Q['compression4'] = prep_convbn(P['compression4'])
    Q['down3'] = prep_convbn(P['down3'])
    Q['down4_a'] = prep_convbn(P['down4_a'])
    Q['down4_b'] = prep_convbn(P['down4_b'])
    spp = {}
    for name in ['scale0', 'scale1', 'scale2', 'scale3', 'scale4',
                 'process1', 'process2', 'process3', 'process4',
                 'compression', 'shortcut']:
        spp[name] = prep_bnconv(P['spp'][name])
    Q['spp'] = spp
    for h in ['out_confidence', 'out_offset', 'out_instance']:
        Q[h] = prep_output(P[h])
    return Q


# -----------------------------------------------------------------------------
# Block / layer / DAPPM / head forward
# -----------------------------------------------------------------------------
def basic_block_apply(x, bp, pre_relu=False):
    if 'ds' in bp:
        residual = run_conv(x, bp['ds'], stride=bp['stride'], pre_relu=pre_relu)
        res_relu = False
    else:
        residual = x
        res_relu = pre_relu           # identity residual is relu(x); fused in epilogue
    out = run_conv(x, bp['conv1'], stride=bp['stride'], relu=True, pre_relu=pre_relu)
    out = run_conv(out, bp['conv2'], residual=residual, res_relu=res_relu,
                   relu=(not bp['no_relu']))
    return out


def bottleneck_apply(x, bp, pre_relu=False):
    if 'ds' in bp:
        residual = run_conv(x, bp['ds'], stride=bp['stride'], pre_relu=pre_relu)
        res_relu = False
    else:
        residual = x
        res_relu = pre_relu
    out = run_conv(x, bp['conv1'], relu=True, pre_relu=pre_relu)
    out = run_conv(out, bp['conv2'], stride=bp['stride'], relu=True)
    out = run_conv(out, bp['conv3'], residual=residual, res_relu=res_relu,
                   relu=(not bp['no_relu']))
    return out


def layer_apply(x, lp, pre_relu=False):
    fn = basic_block_apply if lp['type'] == 'basic' else bottleneck_apply
    for idx, bp in enumerate(lp['blocks']):
        x = fn(x, bp, pre_relu=(pre_relu and idx == 0))
    return x


def dappm_apply(x, q):
    n, h, w, _ = x.shape
    x0 = run_conv(x, q['scale0'], pre_relu=True)
    x1 = bilinear_resize(run_conv(avg_pool(x, 5, 2, 2), q['scale1'], pre_relu=True), h, w) + x0
    x1 = run_conv(x1, q['process1'], pre_relu=True)
    x2 = bilinear_resize(run_conv(avg_pool(x, 9, 4, 4), q['scale2'], pre_relu=True), h, w) + x1
    x2 = run_conv(x2, q['process2'], pre_relu=True)
    x3 = bilinear_resize(run_conv(avg_pool(x, 17, 8, 8), q['scale3'], pre_relu=True), h, w) + x2
    x3 = run_conv(x3, q['process3'], pre_relu=True)
    gap = jnp.mean(x.astype(jnp.float32), axis=(1, 2), keepdims=True).astype(CDT)
    x4 = bilinear_resize(run_conv(gap, q['scale4'], pre_relu=True), h, w) + x3
    x4 = run_conv(x4, q['process4'], pre_relu=True)
    cat = jnp.concatenate([x0, x1, x2, x3, x4], axis=-1)
    return run_conv(cat, q['compression'], pre_relu=True) + run_conv(x, q['shortcut'], pre_relu=True)


def output_apply(x, q):
    y = run_conv(x, q['conv1'], relu=True)
    return run_conv(y, q['conv2'], out_dtype=jnp.float32)


# -----------------------------------------------------------------------------
# Full PI_DDRNetSL forward
# -----------------------------------------------------------------------------
def pi_ddrnet_forward(Q, inputs_nchw):
    h_in, w_in = inputs_nchw.shape[-2], inputs_nchw.shape[-1]
    ho, wo = h_in // 8, w_in // 8
    x = jnp.transpose(inputs_nchw, (0, 2, 3, 1)).astype(CDT)   # -> NHWC bf16 once

    # conv1: Conv3x3 s2 + BN + ReLU, Conv3x3 s2 + BN + ReLU
    x = run_conv(x, Q['conv1_a'], stride=2, relu=True)
    x = run_conv(x, Q['conv1_b'], stride=2, relu=True)

    x = layer_apply(x, Q['layer2'], pre_relu=True)               # layer2(relu(x))
    l0 = x
    x = layer_apply(x, Q['layer3'], pre_relu=True)               # layer3(relu(x))
    l1 = x

    x_ = layer_apply(l0, Q['layer3_'], pre_relu=True)            # layer3_(relu(l0))
    # x = x + down3(relu(x_))   (relu prologue + residual add fused in the conv kernel)
    x = run_conv(x_, Q['down3'], stride=2, residual=x, pre_relu=True)
    comp3 = run_conv(l1, Q['compression3'], pre_relu=True)
    x_ = x_ + bilinear_resize(comp3, ho, wo)

    features = layer_apply(x, Q['layer4'], pre_relu=True)        # layer4(relu(x))
    l2 = features
    x_ = layer_apply(x_, Q['layer4_'], pre_relu=True)            # layer4_(relu(x_))
    # x = features + down4(relu(x_))
    d4 = run_conv(x_, Q['down4_a'], stride=2, relu=True, pre_relu=True)
    x = run_conv(d4, Q['down4_b'], stride=2, residual=features)
    comp4 = run_conv(l2, Q['compression4'], pre_relu=True)
    x_ = x_ + bilinear_resize(comp4, ho, wo)

    x_ = layer_apply(x_, Q['layer5_'], pre_relu=True)             # layer5_(relu(x_))
    x5 = layer_apply(x, Q['layer5'], pre_relu=True)               # layer5(relu(x))
    features_out = bilinear_resize(dappm_apply(x5, Q['spp']), ho, wo)
    _final_feature_in = features_out + x_   # computed in the reference but unused downstream

    out_confidence = output_apply(features_out, Q['out_confidence'])
    out_offset = output_apply(features_out, Q['out_offset'])
    out_instance = output_apply(features_out, Q['out_instance'])

    to_nchw = lambda t: jnp.transpose(t, (0, 3, 1, 2))
    results = [to_nchw(out_confidence), to_nchw(out_offset), to_nchw(out_instance)]
    return ([results], [to_nchw(features.astype(jnp.float32))])


# -----------------------------------------------------------------------------
# Small numerical self-check of the fused conv against lax.conv (bf16 tolerance)
# -----------------------------------------------------------------------------
def _selftest_conv():
    k1, k2, k3 = jax.random.split(jax.random.PRNGKey(1), 3)
    x = jax.random.normal(k1, (2, 9, 11, 8), jnp.float32)
    w = jax.random.normal(k2, (16, 8, 3, 3), jnp.float32) / math.sqrt(72.0)
    scale = 1.0 + 0.1 * jax.random.normal(k3, (16,), jnp.float32)
    bias = 0.1 * jnp.arange(16, dtype=jnp.float32)
    cp = {'wmat': jnp.transpose(w, (2, 3, 1, 0)).reshape(72, 16).astype(CDT),
          'scale': scale.reshape(1, 16), 'bias': bias.reshape(1, 16),
          'k': 3, 'cin': 8, 'cout': 16}
    for stride in (1, 2):
        got = run_conv(x.astype(CDT), cp, stride=stride, relu=True).astype(jnp.float32)
        ref = lax.conv_general_dilated(
            x, jnp.transpose(w, (2, 3, 1, 0)), (stride, stride), [(1, 1), (1, 1)],
            dimension_numbers=('NHWC', 'HWIO', 'NHWC'))
        ref = jnp.maximum(ref * scale + bias, 0.0)
        err = float(jnp.max(jnp.abs(got - ref)))
        tol = 0.05 * (float(jnp.max(jnp.abs(ref))) + 1e-3)
        assert err <= tol, ("conv selftest failed", stride, err, tol)


# -----------------------------------------------------------------------------
# Driver
# -----------------------------------------------------------------------------
if __name__ == "__main__":
    _selftest_conv()

    # Small config consistent with DDRNet-slim constraints: head_planes == planes*4
    planes, spp_planes, head_planes, feature_size = 8, 16, 32, 4
    raw_params = init_model(jax.random.PRNGKey(42), planes=planes, spp_planes=spp_planes,
                            head_planes=head_planes, feature_size=feature_size,
                            layers_cfg=(1, 1, 1, 1))
    prepped = prepare_model(raw_params)   # fold BN + pre-transpose/cast weights ONCE

    x = jax.random.normal(jax.random.PRNGKey(0), (2, 3, 64, 64), jnp.float32)

    fwd = jax.jit(lambda inp: pi_ddrnet_forward(prepped, inp))
    (results_list,), (features,) = fwd(x)
    jax.block_until_ready(results_list)
    jax.block_until_ready(features)

    conf, off, inst = results_list
    assert conf.shape == (2, 1, 8, 8), conf.shape
    assert off.shape == (2, 2, 8, 8), off.shape
    assert inst.shape == (2, feature_size, 8, 8), inst.shape
    assert features.shape == (2, planes * 8, 2, 2), features.shape
    assert bool(jnp.all(jnp.isfinite(conf))) and bool(jnp.all(jnp.isfinite(features)))
    print("KERNEL_OK")
</pallas_src>

<mosaic_0001>
module attributes {stable_mosaic.version = 11 : i64} {
  func.func @_conv_kernel(%arg0: i32, %arg1: memref<1x156x8xbf16, #tpu.memory_space<vmem>>, %arg2: memref<72x16xbf16, #tpu.memory_space<vmem>>, %arg3: memref<1x16xf32, #tpu.memory_space<vmem>>, %arg4: memref<1x16xf32, #tpu.memory_space<vmem>>, %arg5: memref<1x117x16xbf16, #tpu.memory_space<vmem>>) attributes {dimension_semantics = [#tpu.dimension_semantics<parallel>], iteration_bounds = array<i64: 2>, scalar_prefetch = 0 : i64, scratch_operands = 0 : i64, tpu.core_type = #tpu.core_type<tc>, window_params = [{transform_indices = @transform_0, window_bounds = array<i64: 1, 156, 8>}, {pipeline_mode = #tpu.pipeline_mode<synchronous>, transform_indices = @transform_1, window_bounds = array<i64: 72, 16>}, {pipeline_mode = #tpu.pipeline_mode<synchronous>, transform_indices = @transform_2, window_bounds = array<i64: 1, 16>}, {pipeline_mode = #tpu.pipeline_mode<synchronous>, transform_indices = @transform_3, window_bounds = array<i64: 1, 16>}, {transform_indices = @transform_4, window_bounds = array<i64: 1, 117, 16>}]} {
    %c0 = arith.constant 0 : index
    %c0_0 = arith.constant 0 : index
    %c0_1 = arith.constant 0 : index
    %0 = vector.load %arg1[%c0, %c0_0, %c0_1] : memref<1x156x8xbf16, #tpu.memory_space<vmem>>, vector<1x156x8xbf16>
    %1 = vector.shape_cast %0 : vector<1x156x8xbf16> to vector<156x8xbf16>
    %2 = vector.extract_strided_slice %1 {offsets = [0, 0], sizes = [117, 8], strides = [1, 1]} : vector<156x8xbf16> to vector<117x8xbf16>
    %3 = vector.extract_strided_slice %1 {offsets = [1, 0], sizes = [117, 8], strides = [1, 1]} : vector<156x8xbf16> to vector<117x8xbf16>
    %4 = vector.extract_strided_slice %1 {offsets = [2, 0], sizes = [117, 8], strides = [1, 1]} : vector<156x8xbf16> to vector<117x8xbf16>
    %5 = vector.extract_strided_slice %1 {offsets = [13, 0], sizes = [117, 8], strides = [1, 1]} : vector<156x8xbf16> to vector<117x8xbf16>
    %6 = vector.extract_strided_slice %1 {offsets = [14, 0], sizes = [117, 8], strides = [1, 1]} : vector<156x8xbf16> to vector<117x8xbf16>
    %7 = vector.extract_strided_slice %1 {offsets = [15, 0], sizes = [117, 8], strides = [1, 1]} : vector<156x8xbf16> to vector<117x8xbf16>
    %8 = vector.extract_strided_slice %1 {offsets = [26, 0], sizes = [117, 8], strides = [1, 1]} : vector<156x8xbf16> to vector<117x8xbf16>
    %9 = vector.extract_strided_slice %1 {offsets = [27, 0], sizes = [117, 8], strides = [1, 1]} : vector<156x8xbf16> to vector<117x8xbf16>
    %10 = vector.extract_strided_slice %1 {offsets = [28, 0], sizes = [117, 8], strides = [1, 1]} : vector<156x8xbf16> to vector<117x8xbf16>
    %11 = tpu.concatenate %2, %3, %4, %5, %6, %7, %8, %9, %10 in 1 : vector<117x8xbf16>, vector<117x8xbf16>, vector<117x8xbf16>, vector<117x8xbf16>, vector<117x8xbf16>, vector<117x8xbf16>, vector<117x8xbf16>, vector<117x8xbf16>, vector<117x8xbf16> -> vector<117x72xbf16>
    %c0_2 = arith.constant 0 : index
    %c0_3 = arith.constant 0 : index
    %12 = vector.load %arg2[%c0_2, %c0_3] : memref<72x16xbf16, #tpu.memory_space<vmem>>, vector<72x16xbf16>
    %cst = arith.constant dense<0.000000e+00> : vector<117x16xf32>
    %13 = tpu.matmul %11, %12, %cst {dimension_numbers = #tpu.dot_dimension_numbers<[1], [0], [0], [1], [0, 0, 1, 1], [], []>} : vector<117x72xbf16>, vector<72x16xbf16>, vector<117x16xf32> -> vector<117x16xf32>
    %c0_4 = arith.constant 0 : index
    %c0_5 = arith.constant 0 : index
    %14 = vector.load %arg3[%c0_4, %c0_5] : memref<1x16xf32, #tpu.memory_space<vmem>>, vector<1x16xf32>
    %15 = vector.broadcast %14 : vector<1x16xf32> to vector<117x16xf32>
    %16 = arith.mulf %13, %15 : vector<117x16xf32>
    %c0_6 = arith.constant 0 : index
    %c0_7 = arith.constant 0 : index
    %17 = vector.load %arg4[%c0_6, %c0_7] : memref<1x16xf32, #tpu.memory_space<vmem>>, vector<1x16xf32>
    %18 = vector.broadcast %17 : vector<1x16xf32> to vector<117x16xf32>
    %19 = arith.addf %16, %18 : vector<117x16xf32>
    %cst_8 = arith.constant 0.000000e+00 : f32
    %20 = vector.broadcast %cst_8 : f32 to vector<117x16xf32>
    %21 = arith.maximumf %19, %20 : vector<117x16xf32>
    %22 = arith.truncf %21 : vector<117x16xf32> to vector<117x16xbf16>
    %c0_9 = arith.constant 0 : index
    %c0_10 = arith.constant 0 : index
    %c0_11 = arith.constant 0 : index
    %23 = vector.load %arg5[%c0_9, %c0_10, %c0_11] : memref<1x117x16xbf16, #tpu.memory_space<vmem>>, vector<1x117x16xbf16>
    %24 = vector.shape_cast %23 : vector<1x117x16xbf16> to vector<117x16xbf16>
    %25 = vector.shape_cast %22 : vector<117x16xbf16> to vector<1x117x16xbf16>
    tpu.vector_store %arg5[%c0_9, %c0_10, %c0_11], %25 {strides = array<i32>} : memref<1x117x16xbf16, #tpu.memory_space<vmem>>, vector<1x117x16xbf16>,
    return
  }
  func.func @transform_0(%arg0: i32) -> (i32, i32, i32) {
    %c0_i32 = arith.constant 0 : i32
    %c0_i32_0 = arith.constant 0 : i32
    %c0_i32_1 = arith.constant 0 : i32
    return %arg0, %c0_i32, %c0_i32_0 : i32, i32, i32
  }
  func.func @transform_1(%arg0: i32) -> (i32, i32) {
    %c0_i32 = arith.constant 0 : i32
    %c0_i32_0 = arith.constant 0 : i32
    %c0_i32_1 = arith.constant 0 : i32
    return %c0_i32, %c0_i32_0 : i32, i32
  }
  func.func @transform_2(%arg0: i32) -> (i32, i32) {
    %c0_i32 = arith.constant 0 : i32
    %c0_i32_0 = arith.constant 0 : i32
    %c0_i32_1 = arith.constant 0 : i32
    return %c0_i32, %c0_i32_0 : i32, i32
  }
  func.func @transform_3(%arg0: i32) -> (i32, i32) {
    %c0_i32 = arith.constant 0 : i32
    %c0_i32_0 = arith.constant 0 : i32
    %c0_i32_1 = arith.constant 0 : i32
    return %c0_i32, %c0_i32_0 : i32, i32
  }
  func.func @transform_4(%arg0: i32) -> (i32, i32, i32) {
    %c0_i32 = arith.constant 0 : i32
    %c0_i32_0 = arith.constant 0 : i32
    %c0_i32_1 = arith.constant 0 : i32
    return %arg0, %c0_i32, %c0_i32_0 : i32, i32, i32
  }
}

</mosaic_0001>

<bundles_post_ra>
// kernel: tpu_custom_call.1
= control target key start
LH: loop header
LB: loop body
LE: loop exit
PB: predicated region body
PF: predicated region fallthrough
CT: control target
= control target key end

     0   :  { %s1360_s15 = smov 0   ;;  %s2036_s0 = inlined_call_operand.vmem [shape: bf16[2,156,8], index: 0, kind: input, shape index: {}]   ;;  %s2037_s1 = inlined_call_operand.vmem [shape: bf16[72,16], index: 1, kind: input, shape index: {}]   ;;  %s2038_s2 = inlined_call_operand.vmem [shape: f32[1,16], index: 2, kind: input, shape index: {}]   ;;  %s2039_s3 = inlined_call_operand.vmem [shape: f32[1,16], index: 3, kind: input, shape index: {}]   ;;  %s2040_s4 = inlined_call_operand.vmem [shape: bf16[2,117,16], index: 4, kind: output, shape index: {}]  }
   0x1 LB: > { %s1155_s16 = sadd.s32 4294967295, %s1325_s15   ;;  %p1159_p0 = scmp.ge.s32.totalorder %s1325_s15, 1  ;;  %s1325_s15 = sphi %s1360_s15, %s14_s15  }
   0x2   : > { %p162_p1 = scmp.lt.s32.totalorder %s1325_s15, 3 }
   0x4   : > { %p163_p2 = pnand %p1159_p0, %p162_p1 }
   0x5   : > { %p188_p3 = scmp.lt.s32.totalorder (!%p163_p2), %s1155_s16, 1  ;;  %vm336_vm0 = vcmask (!%p163_p2), 1046528   ;;  %vm256_vm1 = vsmask.f32 (!%p163_p2), 7424  ;;  %s1327_s21 = smov (!%p163_p2), 16   ;;  %vm468_vm3 = vcmask (!%p163_p2), 1044480  }
   0x6   : > { %166 = sbr.rel (%p163_p2) target bundleno = 490 (0x1ea), region = 36  ;;  %vm380_vm2 = vsmask.f32 (!%p163_p2), 5376  ;;  %s1328_s22 = smov (!%p163_p2), 8   ;;  %vm500_vm4 = vsmask.f32 (!%p163_p2), 4352 }
   0x7   : > { %s1329_s23 = smov (!%p163_p2), 24   ;;  %s1330_s24 = smov (!%p163_p2), 32   ;;  %vm582_vm5 = vsmask.f32 (!%p163_p2), 6400  ;;  %vm638_vm6 = vcmask (!%p163_p2), 1045504   ;;  %vm859_vm7 = vcmask (!%p163_p2), 1043456  }
   0x8   : > { %s1331_s25 = smov (!%p163_p2), 40   ;;  %s1332_s30 = smov (!%p163_p2), 48   ;;  %vm670_vm8 = vcmask (!%p163_p2), 64512   ;;  %vm704_vm9 = vcmask (!%p163_p2), 195584   ;;  %vm687_vm10 = vcmask (!%p163_p2), 130048   ;;  %vm721_vm11 = vcmask (!%p163_p2), 261120  }
   0x9   : > { %s1333_s9 = smov (!%p163_p2), 56   ;;  %s1334_s12 = smov (!%p163_p2), 64   ;;  %vm738_vm12 = vcmask (!%p163_p2), 326656   ;;  %vm755_vm13 = vcmask (!%p163_p2), 392192   ;;  %vm772_vm14 = vcmask (!%p163_p2), 457728   ;;  %vm789_vm15 = vcmask (!%p163_p2), 523264  }
   0xd   : > { %s2057_s16 = smov (!%p188_p3, %s1155_s16), 1 }
   0xe   : > { %s1278_s17 = smul.u32 80, %s2057_s16 }
   0xf   : > { %s1279_s19 = smul.u32 60, %s2057_s16 }
  0x10   : > { %s1374_s20 = scalar_lea.vmem %s2036_s0, %s1278_s17 }
  0x11   : > { %v1377_v0 = vld [vmem:[%s1374_s20 + $0x20] sm:$0xf]  ;;  %v208_v1 = vld [vmem:[%s1374_s20 + $0x24] sm:$0xf]  ;;  %v209_v2 = vld [vmem:[%s1374_s20 + $0x28] sm:$0xf] }
  0x12   : > { %v210_v3 = vld [vmem:[%s1374_s20 + $0x2c] sm:$0xf]  ;;  %v211_v4 = vld [vmem:[%s1374_s20 + $0x30] sm:$0xf]  ;;  %v1384_v5 = vcombine.low %v1377_v0, %v208_v1  ;;  %v1388_v7 = vcombine.low %v208_v1, %v209_v2  ;;  %v199_v9 = vld [vmem:[%s1374_s20] sm:$0xf] }
  0x13   : > { %v1386_v6 = vcombine.low %v209_v2, %v210_v3  ;;  %v1390_v8 = vcombine.low %v210_v3, %v211_v4  ;;  %v200_v10 = vld [vmem:[%s1374_s20 + $0x4] sm:$0xf]  ;;  %v201_v11 = vld [vmem:[%s1374_s20 + $0x8] sm:$0xf]  ;;  %v202_v13 = vld [vmem:[%s1374_s20 + $0xc] sm:$0xf] }
  0x14   : > { %v344_v12 = vrot.slane %v1384_v5, 1  ;;  %v203_v14 = vld [vmem:[%s1374_s20 + $0x10] sm:$0xf]  ;;  %v1398_v15 = vcombine.low %v199_v9, %v200_v10  ;;  %v289_v16 = vshll.u32 %v1384_v5, 16  ;;  %v1401_v17 = vcombine.low %v200_v10, %v201_v11  ;;  %v212_v21 = vld [vmem:[%s1374_s20 + $0x34] sm:$0xf] }
  0x15   : > { %v346_v18 = vrot.slane %v1386_v6, 1  ;;  %v1404_v19 = vcombine.low %v201_v11, %v202_v13  ;;  %v1406_v20 = vcombine.low %v202_v13, %v203_v14  ;;  %v1410_v22 = vld [vmem:[%s1374_s20 + $0x38] sm:$0xf]  ;;  %v297_v23 = vshll.u32 %v1386_v6, 16  ;;  %v204_v27 = vld [vmem:[%s1374_s20 + $0x14] sm:$0xf] }
  0x16   : > { %v337_v24 = vrot.slane %v1398_v15, 1  ;;  %v1414_v25 = vcombine.low %v211_v4, %v212_v21  ;;  %v1417_v26 = vcombine.low %v212_v21, %v1410_v22  ;;  %v1421_v28 = vld [vmem:[%s1374_s20 + $0x18] sm:$0xf]  ;;  %v258_v29 = vshrl.u32 %v1398_v15, 16 }
  0x17   : > { %v347_v30 = vsel %vm336_vm0, %v344_v12, %v346_v18  ;;  %v338_v31 = vrot.slane %v1404_v19, 1  ;;  %v1428_v32 = vcombine.low %v203_v14, %v204_v27  ;;  %v1431_v33 = vcombine.low %v204_v27, %v1421_v28 }
  0x18   : > { %360 = vrot.lane.b32.xlu1 %v347_v30, %s1327_s21  ;;  %v348_v34 = vrot.slane %v1414_v25, 1  ;;  %v265_v35 = vshll.u32 %v1404_v19, 16  ;;  %v269_v36 = vshrl.u32 %v1404_v19, 16  ;;  %v260_v37 = vshll.u32 %v1398_v15, 16 }
  0x19   : > { %v339_v38 = vsel %vm336_vm0, %v337_v24, %v338_v31  ;;  %v340_v39 = vrot.slane %v1428_v32, 1  ;;  %v273_v40 = vshll.u32 %v1428_v32, 16  ;;  %v299_v41 = vrot.slane %v297_v23, 1 }
  0x1a   : > { %352 = vrot.lane.b32.xlu0 %v339_v38, %s1327_s21  ;;  %v349_v42 = vsel %vm336_vm0, %v346_v18, %v348_v34  ;;  %v267_v43 = vrot.slane %v265_v35, 1  ;;  %v262_v44 = vrot.slane %v260_v37, 1  ;;  %v301_v45 = vshrl.u32 %v1386_v6, 16 }
  0x1b   : > { %v341_v46 = vsel %vm336_vm0, %v338_v31, %v340_v39  ;;  %v1449_v47 = vrot.slane %v273_v40, 1  ;;  %v305_v48 = vshll.u32 %v1414_v25, 16  ;;  %v1452_v49 = vrot.slane %v289_v16, 1 }
  0x1c   : > { %362 = vrot.lane.b32.xlu1 %v349_v42, %s1327_s21  ;;  %v271_v50 = vor.u32 %v269_v36, %v267_v43  ;;  %v263_v51 = vor.u32 %v262_v44, %v258_v29  ;;  %v303_v52 = vor.u32 %v301_v45, %v299_v41  ;;  %v293_v53 = vshrl.u32 %v1384_v5, 16 }
  0x1d   : > { %v1456_v54 = vrot.slane %v305_v48, 1  ;;  %v1459_v55 = vshrl.u32 %v1388_v7, 16  ;;  %v1462_v56 = vshll.u32 %v1388_v7, 16  ;;  %v1465_v57 = vshrl.u32 %v1390_v8, 16 }
  0x1e   : > { %354 = vrot.lane.b32.xlu0 %v341_v46, %s1327_s21  ;;  %v276_v58 = vsel %vm256_vm1, %v271_v50, %v1449_v47  ;;  %v268_v59 = vsel %vm256_vm1, %v263_v51, %v267_v43  ;;  %v295_v60 = vor.u32 %v293_v53, %v1452_v49  ;;  %v1473_v61 = vshll.u32 %v1390_v8, 16 }
  0x1f   : > { %v308_v62 = vsel %vm256_vm1, %v303_v52, %v1456_v54  ;;  %v419_v63 = vrot.slane %v1459_v55, 2  ;;  %v422_v1 = vrot.slane %v1462_v56, 3  ;;  %v428_v2 = vrot.slane %v1465_v57, 2 }
  0x20   : > { %322 = vrot.lane.b32.xlu1 %v276_v58, %s1328_s22  ;;  %v300_v3 = vsel %vm256_vm1, %v295_v60, %v299_v41  ;;  %v431_v4 = vrot.slane %v1473_v61, 3  ;;  %v382_v9 = vshrl.u32 %v1401_v17, 16  ;;  %v385_v10 = vshll.u32 %v1401_v17, 16 }
  0x21   : > { %v1485_v11 = vor.u32 %v422_v1, %v419_v63  ;;  %v1488_v13 = vshrl.u32 %v1406_v20, 16  ;;  %v1491_v14 = vshll.u32 %v1406_v20, 16  ;;  %v1494_v16 = vshrl.u32 %v1417_v26, 16 }
  0x22   : > { %320 = vrot.lane.b32.xlu0 %v268_v59, %s1328_s22  ;;  %v432_v18 = vor.u32 %v431_v4, %v428_v2  ;;  %v384_v21 = vrot.slane %v382_v9, 2  ;;  %v387_v23 = vrot.slane %v385_v10, 3  ;;  %v1498_v24 = vshll.u32 %v1417_v26, 16 }
  0x23   : > { %v392_v27 = vrot.slane %v1488_v13, 2  ;;  %v395_v29 = vrot.slane %v1491_v14, 3  ;;  %v437_v30 = vrot.slane %v1494_v16, 2  ;;  %v1504_v31 = vshrl.u32 %v1431_v33, 16 }
  0x24   : > { %330 = vrot.lane.b32.xlu1 %v308_v62, %s1328_s22  ;;  %v388_v35 = vor.u32 %v387_v23, %v384_v21  ;;  %v440_v36 = vrot.slane %v1498_v24, 3  ;;  %v1509_v37 = vshll.u32 %v1431_v33, 16  ;;  %v433_v38 = vsel %vm380_vm2, %v1485_v11, %v432_v18 }
  0x25   : > { %v396_v40 = vor.u32 %v395_v29, %v392_v27  ;;  %v401_v41 = vrot.slane %v1504_v31, 2  ;;  %v476_v46 = vrot.slane %v1388_v7, 3  ;;  %v478_v48 = vrot.slane %v1390_v8, 3 }
  0x26   : > { %328 = vrot.lane.b32.xlu0 %v300_v3, %s1328_s22  ;;  %v1515_v42 = vor.u32 %v440_v36, %v437_v30  ;;  %v404_v43 = vrot.slane %v1509_v37, 3  ;;  %v469_v52 = vrot.slane %v1401_v17, 3  ;;  %v470_v53 = vrot.slane %v1406_v20, 3 }
  0x27   : > { %v397_v44 = vsel %vm380_vm2, %v388_v35, %v396_v40  ;;  %v479_v58 = vsel %vm468_vm3, %v476_v46, %v478_v48  ;;  %v2042_v59 = vrot.slane %v1417_v26, 3  ;;  %v2041_v60 = vrot.slane %v1431_v33, 3 }
  0x28   : > { %460 = vrot.lane.b32.xlu1 %v433_v38, %s1329_s23  ;;  %v1520_v45 = vor.u32 %v404_v43, %v401_v41  ;;  %v442_v50 = vsel %vm380_vm2, %v432_v18, %v1515_v42  ;;  %v516_v62 = vrot.slane %v1459_v55, 3  ;;  %v517_v63 = vrot.slane %v1462_v56, 4 }
  0x29   : > { %v520_v1 = vrot.slane %v1465_v57, 3  ;;  %v521_v17 = vrot.slane %v1473_v61, 4  ;;  %v501_v2 = vrot.slane %v382_v9, 3  ;;  %v502_v3 = vrot.slane %v385_v10, 4 }
  0x2a   : > { %452 = vrot.lane.b32.xlu0 %v397_v44, %s1329_s23  ;;  %v406_v51 = vsel %vm380_vm2, %v396_v40, %v1520_v45  ;;  %v504_v4 = vrot.slane %v1488_v13, 3  ;;  %v505_v18 = vrot.slane %v1491_v14, 4  ;;  %v471_v21 = vsel %vm468_vm3, %v469_v52, %v470_v53  ;;  %v206_v40 = vld [vmem:[%s1374_s20 + $0x1c] sm:$0xf] }
  0x2b   : > { %v524_v23 = vrot.slane %v1494_v16, 3  ;;  %v525_v27 = vrot.slane %v1498_v24, 4  ;;  %v481_v29 = vsel %vm468_vm3, %v478_v48, %v2042_v59  ;;  %v1551_v9 = vor.u32 %v517_v63, %v516_v62 }
  0x2c   : > { %462 = vrot.lane.b32.xlu1 %v442_v50, %s1329_s23  ;;  %v522_v10 = vor.u32 %v521_v17, %v520_v1  ;;  %v473_v30 = vsel %vm468_vm3, %v470_v53, %v2041_v60  ;;  %v503_v35 = vor.u32 %v502_v3, %v501_v2  ;;  %v506_v36 = vor.u32 %v505_v18, %v504_v4  ;;  %v1314_v18 = vld [vmem:[%s2037_s1] sm:$0xff]  }
  0x2d   : > { %v508_v38 = vrot.slane %v1504_v31, 3  ;;  %v1559_v41 = vor.u32 %v525_v27, %v524_v23  ;;  %v509_v43 = vrot.slane %v1509_v37, 4  ;;  %v558_v44 = vrot.slane %v1390_v8, 1  ;;  %1240 = vmatprep.subr.bf16.mxu0 %v1314_v18  ;;  %1266 = vmatprep.subr.bf16.mxu1 %v1314_v18 }
  0x2e   : > { %454 = vrot.lane.b32.xlu0 %v406_v51, %s1329_s23  ;;  %v560_v48 = vrot.slane %v1417_v26, 1  ;;  %v523_v50 = vsel %vm500_vm4, %v1551_v9, %v522_v10  ;;  %v1568_v51 = vcombine.low %v206_v40, %v1377_v0  ;;  %v551_v52 = vrot.slane %v1406_v20, 1  ;;  %1241 = vmatpush3.bf16.msra.mxu0 %v1314_v18 }
  0x2f   : > { %v552_v53 = vrot.slane %v1431_v33, 1  ;;  %v507_v62 = vsel %vm500_vm4, %v503_v35, %v506_v36  ;;  %v527_v63 = vsel %vm500_vm4, %v522_v10, %v1559_v41  ;;  %v1579_v1 = vor.u32 %v509_v43, %v508_v38  ;;  %1271 = vmatpush3.bf16.msra.mxu1 %v1314_v18 }
  0x30   : > { %492 = vrot.lane.b32.xlu1 %v479_v58, %s1330_s24  ;;  %v1574_v58 = vld [vmem:[%s1374_s20 + $0x3c] sm:$0xff]   ;;  %v561_v0 = vsel %vm336_vm0, %v558_v44, %v560_v48  ;;  %v598_v17 = vrot.slane %v1465_v57, 1  ;;  %v599_v2 = vrot.slane %v1473_v61, 2  ;;  %v602_v3 = vrot.slane %v1494_v16, 1 }
  0x31   : > { %v603_v4 = vrot.slane %v1498_v24, 2  ;;  %v584_v23 = vrot.slane %v1491_v14, 2  ;;  %v586_v27 = vrot.slane %v1504_v31, 1  ;;  %v562_v57 = vrot.slane %v1574_v58, 1 }
  0x32   : > { %484 = vrot.lane.b32.xlu0 %v471_v21, %s1330_s24  ;;  %v583_v21 = vrot.slane %v1488_v13, 1  ;;  %v554_v61 = vrot.slane %v1568_v51, 1  ;;  %v1600_v16 = vshrl.u32 %v1574_v58, 16  ;;  %v1603_v24 = vshll.u32 %v1574_v58, 16 }
  0x33   : > { %v511_v13 = vsel %vm500_vm4, %v506_v36, %v1579_v1  ;;  %v408_v14 = vshrl.u32 %v1568_v51, 16  ;;  %v1610_v31 = vcombine.low %v1410_v22, %v1410_v22  ;;  %v553_v10 = vsel %vm336_vm0, %v551_v52, %v552_v53  ;;  %v1315_v22 = vld [vmem:[%s2037_s1 + $0x8] sm:$0xff]  }
  0x34   : > { %494 = vrot.lane.b32.xlu1 %v481_v29, %s1330_s24  ;;  %v587_v29 = vrot.slane %v1509_v37, 2  ;;  %v1613_v37 = vcombine.low %v1421_v28, %v206_v40  ;;  %v604_v35 = vor.u32 %v603_v4, %v602_v3  ;;  %v411_v36 = vshll.u32 %v1568_v51, 16  ;;  %1242 = vmatprep.subr.bf16.mxu0 %v1315_v22 }
  0x35   : > { %v585_v38 = vor.u32 %v584_v23, %v583_v21  ;;  %v2043_v28 = vrot.slane %v1610_v31, 1  ;;  %v555_v52 = vsel %vm336_vm0, %v552_v53, %v554_v61  ;;  %1267 = vmatprep.subr.bf16.mxu1 %v1315_v22  ;;  %v410_v18 = vrot.slane %v408_v14, 2  ;;  %1243 = vmatpush3.bf16.msra.mxu0 %v1315_v22 }
  0x36   : > { %486 = vrot.lane.b32.xlu0 %v473_v30, %s1330_s24  ;;  %v1617_v30 = vor.u32 %v599_v2, %v598_v17  ;;  %v1623_v43 = vor.u32 %v587_v29, %v586_v27  ;;  %v342_v40 = vrot.slane %v1613_v37, 1  ;;  %v590_v17 = vrot.slane %v408_v14, 1  ;;  %1272 = vmatpush3.bf16.msra.mxu1 %v1315_v22 }
  0x37   : > { %v646_v2 = vrot.slane %v1390_v8, 2  ;;  %v1642_v3 = vsel %vm336_vm0, %v348_v34, %v2043_v28  ;;  %v591_v53 = vrot.slane %v411_v36, 2  ;;  %v413_v21 = vrot.slane %v411_v36, 3  ;;  %v1316_v34 = vld [vmem:[%s2037_s1 + $0x10] sm:$0xff]  }
  0x38   : > { %540 = vrot.lane.b32.xlu1 %v523_v50, %s1331_s25  ;;  %v563_v50 = vsel %vm336_vm0, %v560_v48, %v562_v57  ;;  %v1647_v48 = vsel %vm336_vm0, %v340_v39, %v342_v40  ;;  %v1653_v4 = vsel %vm336_vm0, %v342_v40, %v344_v12  ;;  %v605_v39 = vsel %vm582_vm5, %v1617_v30, %v604_v35  ;;  %v216_v12 = vld [vmem:[%s1374_s20 + $0x44] sm:$0xf] }
  0x39   : > { %v589_v23 = vsel %vm582_vm5, %v585_v38, %v1623_v43  ;;  %v2044_v27 = vrot.slane %v1568_v51, 3  ;;  %v1667_v40 = vor.u32 %v413_v21, %v410_v18  ;;  %v512_v60 = vrot.slane %v408_v14, 3  ;;  %1244 = vmatprep.subr.bf16.mxu0 %v1316_v34  ;;  %1268 = vmatprep.subr.bf16.mxu1 %v1316_v34 }
  0x3a   : > { %532 = vrot.lane.b32.xlu0 %v507_v62, %s1331_s25  ;;  %v606_v62 = vrot.slane %v1600_v16, 1  ;;  %v309_v38 = vshrl.u32 %v1414_v25, 16  ;;  %v513_v22 = vrot.slane %v411_v36, 4  ;;  %v277_v14 = vshrl.u32 %v1428_v32, 16  ;;  %1245 = vmatpush3.bf16.msra.mxu0 %v1316_v34 }
  0x3b   : > { %v1676_v28 = vsel %vm468_vm3, %v2044_v27, %v476_v46  ;;  %v1317_v46 = vld [vmem:[%s2037_s1 + $0x18] sm:$0xff]   ;;  %v556_v36 = vrot.slane %v1388_v7, 1  ;;  %1273 = vmatpush3.bf16.msra.mxu1 %v1316_v34  ;;  %v642_v59 = vrot.slane %v1568_v51, 2  ;;  %v2046_v8 = vrot.slane %v1431_v33, 2 }
  0x3c   : > { %542 = vrot.lane.b32.xlu1 %v527_v63, %s1331_s25  ;;  %v607_v63 = vrot.slane %v1603_v24, 2  ;;  %v1690_v18 = vor.u32 %v513_v22, %v512_v60  ;;  %v217_v60 = vld [vmem:[%s1374_s20 + $0x48] sm:$0xf]  ;;  %1246 = vmatprep.subr.bf16.mxu0 %v1317_v46  ;;  %v313_v22 = vshll.u32 %v1610_v31, 16 }
  0x3d   : > { %1269 = vmatprep.subr.bf16.mxu1 %v1317_v46 }
  0x3e   : > { %534 = vrot.lane.b32.xlu0 %v511_v13, %s1331_s25  ;;  %v608_v29 = vor.u32 %v607_v63, %v606_v62  ;;  %v1683_v62 = vsel %vm380_vm2, %v1667_v40, %v1485_v11  ;;  %v1685_v63 = vcombine.low %v216_v12, %v216_v12  ;;  %v650_v13 = vrot.slane %v1574_v58, 2  ;;  %1247 = vmatpush3.bf16.msra.mxu0 %v1317_v46 }
  0x3f   : > { %1274 = vmatpush3.bf16.msra.mxu1 %v1317_v46 }
  0x40   : > { %574 = vrot.lane.b32.xlu1 %v561_v0, %s1332_s30  ;;  %v609_v11 = vsel %vm582_vm5, %v604_v35, %v608_v29  ;;  %v611_v21 = vshrl.u32 %v1685_v63, 16  ;;  %v614_v27 = vshll.u32 %v1685_v63, 16  ;;  %v1715_v35 = vsel %vm336_vm0, %v556_v36, %v558_v44 }
  0x41   : > { %v1179_v44 = vcombine.low %v216_v12, %v217_v60  ;;  %v281_v12 = vshll.u32 %v1613_v37, 16 }
  0x42   : > { %566 = vrot.lane.b32.xlu0 %v553_v10, %s1332_s30  ;;  %v592_v10 = vor.u32 %v591_v53, %v590_v17  ;;  %v595_v17 = vrot.slane %v1462_v56, 2  ;;  %v564_v53 = vrot.slane %v1685_v63, 1  ;;  %v1710_v56 = vsel %vm336_vm0, %v554_v61, %v556_v36 }
  0x43   : > { %v616_v34 = vrot.slane %v614_v27, 2  ;;  %v644_v36 = vrot.slane %v1388_v7, 2  ;;  %v1318_v7 = vld [vmem:[%s2037_s1 + $0x20] ss:$0 sps:$4 sm:$0xff]   ;;  %v1744_v46 = vrot.slane %v1179_v44, 2 }
  0x44   : > { %576 = vrot.lane.b32.xlu1 %v563_v50, %s1332_s30  ;;  %v594_v50 = vrot.slane %v1459_v55, 1  ;;  %v1705_v55 = vsel %vm500_vm4, %v1690_v18, %v1551_v9  ;;  %v1723_v9 = vsel %vm336_vm0, %v562_v57, %v564_v53  ;;  %1276 = vmatprep.subr.msk.bf16.mxu0 %vm859_vm7, %v1318_v7  ;;  %vm842_vm0 = vcmask 588800  }
  0x45   : > { %v1767_v60 = vsel %vm638_vm6, %v650_v13, %v1744_v46  ;;  %1277 = vmatprep.subr.msk.bf16.mxu1 %vm859_vm7, %v1318_v7 }
  0x46   : > { %568 = vrot.lane.b32.xlu0 %v555_v52, %s1332_s30  ;;  %v613_v52 = vrot.slane %v611_v21, 1  ;;  %v596_v61 = vor.u32 %v595_v17, %v594_v50  ;;  %v311_v17 = vor.u32 %v309_v38, %v1456_v54  ;;  %v315_v21 = vrot.slane %v313_v22, 1 }
  0x47   : > { %v285_v22 = vshrl.u32 %v1613_v37, 16 }
  0x48   : > { %627 = vrot.lane.b32.xlu1 %v605_v39, %s1333_s9  ;;  %v593_v39 = vsel %vm582_vm5, %v1623_v43, %v592_v10  ;;  %v1731_v0 = vor.u32 %v616_v34, %v613_v52  ;;  %v1734_v57 = vsel %vm582_vm5, %v592_v10, %v596_v61  ;;  %v1738_v27 = vsel %vm582_vm5, %v596_v61, %v1617_v30 }
  0x49   : > { %v1752_v43 = vsel %vm638_vm6, %v644_v36, %v646_v2  ;;  %v2045_v30 = vrot.slane %v1417_v26, 2  ;;  %v283_v34 = vrot.slane %v281_v12, 1  ;;  %v316_v54 = vsel %vm256_vm1, %v311_v17, %v315_v21 }
  0x4a   : > { %619 = vrot.lane.b32.xlu0 %v589_v23, %s1333_s9  ;;  %v1747_v23 = vsel %vm638_vm6, %v642_v59, %v644_v36  ;;  %v1762_v50 = vsel %vm582_vm5, %v608_v29, %v1731_v0  ;;  %v279_v29 = vor.u32 %v277_v14, %v1449_v47  ;;  %v2049_v61 = vmov %v2046_v8 }
  0x4b   : > { %v649_v10 = vsel %vm638_vm6, %v646_v2, %v2045_v30  ;;  %v2047_v2 = vrot.slane %v1406_v20, 2  ;;  %v317_v20 = vshrl.u32 %v1610_v31, 16  ;;  %v2048_v47 = vmov %v2045_v30 }
  0x4c   : > { %629 = vrot.lane.b32.xlu1 %v609_v11, %s1333_s9  ;;  %v861_v11 = vsel %vm859_vm7, %v1318_v7, 0  ;;  %v284_v38 = vsel %vm256_vm1, %v279_v29, %v283_v34  ;;  %v651_v14 = vsel %vm638_vm6, %v2048_v47, %v650_v13  ;;  %v643_v44 = vsel %vm638_vm6, %v2049_v61, %v642_v59 }
  0x4d   : > { %v641_v52 = vsel %vm638_vm6, %v2047_v2, %v2046_v8  ;;  %1249 = vmatpush3.bf16.msra.mxu0 %v861_v11  ;;  %1275 = vmatpush3.bf16.msra.mxu1 %v861_v11  ;;  %v287_v36 = vor.u32 %v285_v22, %v283_v34  ;;  %v446_v12 = vrot.slane %v1600_v16, 2  ;;  %v449_v13 = vrot.slane %v1603_v24, 3 }
  0x4e   : > { %621 = vrot.lane.b32.xlu0 %v593_v39, %s1333_s9  ;;  %v319_v39 = vor.u32 %v317_v20, %v315_v21  ;;  %v2050_v30 = vrot.slane %v1610_v31, 1 }
  0x4f   : > { %v292_v7 = vsel %vm256_vm1, %v287_v36, %v1452_v49  ;;  %v450_v59 = vor.u32 %v449_v13, %v446_v12  ;;  %vm1079_vm1 = vcmask 125952  }
  0x50   : > { %662 = vrot.lane.b32.xlu1 %v649_v10, %s1334_s12  ;;  %v415_v10 = vsel %vm380_vm2, %v1520_v45, %v1667_v40  ;;  %v2052_v45 = vrot.slane %v1568_v51, 3  ;;  %v2053_v40 = vrot.slane %v1431_v33, 3  ;;  %v515_v51 = vsel %vm500_vm4, %v1579_v1, %v1690_v18 }
  0x51   : > { %v451_v49 = vsel %vm380_vm2, %v1515_v42, %v450_v59  ;;  %v528_v42 = vrot.slane %v1600_v16, 3  ;;  %vm1094_vm2 = vcmask 124928  }
  0x52   : > { %654 = vrot.lane.b32.xlu0 %v641_v52, %s1334_s12 }
  0x54   : > { %332 = vrot.lane.b32.xlu1 %v316_v54, %s1328_s22 }
  0x56   : > { %324 = vrot.lane.b32.xlu0 %v284_v38, %s1328_s22 }
  0x58   : > { %664 = vrot.lane.b32.xlu1 %v651_v14, %s1334_s12 }
  0x5a   : > { %656 = vrot.lane.b32.xlu0 %v643_v44, %s1334_s12 }
  0x5c   : > { %334 = vrot.lane.b32.xlu1 %v319_v39, %s1328_s22 }
  0x5e   : > { %326 = vrot.lane.b32.xlu0 %v292_v7, %s1328_s22 }
  0x60   : > { %364 = vrot.lane.b32.xlu1 %v1642_v3, %s1327_s21  ;;  %v482_v3 = vrot.slane %v1574_v58, 3  ;;  %v475_v58 = vsel %vm468_vm3, %v2053_v40, %v2052_v45 }
  0x62   : > { %356 = vrot.lane.b32.xlu0 %v1647_v48, %s1327_s21  ;;  %v2051_v48 = vrot.slane %v1417_v26, 3 }
  0x64   : > { %366 = vrot.lane.b32.xlu1 %v2050_v30, %s1327_s21  ;;  %v483_v17 = vsel %vm468_vm3, %v2051_v48, %v482_v3  ;;  %vm1095_vm3 = vsmask.f32 2304 }
  0x66   : > { %358 = vrot.lane.b32.xlu0 %v1653_v4, %s1327_s21  ;;  %v529_v4 = vrot.slane %v1603_v24, 4  ;;  %s1976_s21 = scalar_lea.vmem %s2040_s4, %s1279_s19 }
  0x68   : > { %464 = vrot.lane.b32.xlu1 %v451_v49, %s1329_s23  ;;  %v530_v21 = vor.u32 %v529_v4, %v528_v42 }
  0x6a   : > { %456 = vrot.lane.b32.xlu0 %v415_v10, %s1329_s23  ;;  %v531_v26 = vsel %vm500_vm4, %v1559_v41, %v530_v21  ;;  %vm2008_vm4 = vmand %vm1094_vm2, %vm1095_vm3 }
  0x6c   : > { %466 = vrot.lane.b32.xlu1 %v450_v59, %s1329_s23 }
  0x6e   : > { %458 = vrot.lane.b32.xlu0 %v1683_v62, %s1329_s23 }
  0x70   : > { %496 = vrot.lane.b32.xlu1 %v483_v17, %s1330_s24 }
  0x72   : > { %488 = vrot.lane.b32.xlu0 %v475_v58, %s1330_s24 }
  0x74   : > { %498 = vrot.lane.b32.xlu1 %v482_v3, %s1330_s24 }
  0x76   : > { %490 = vrot.lane.b32.xlu0 %v1676_v28, %s1330_s24 }
  0x78   : > { %544 = vrot.lane.b32.xlu1 %v531_v26, %s1331_s25 }
  0x7a   : > { %536 = vrot.lane.b32.xlu0 %v515_v51, %s1331_s25 }
  0x7c   : > { %546 = vrot.lane.b32.xlu1 %v530_v21, %s1331_s25 }
  0x7e   : > { %538 = vrot.lane.b32.xlu0 %v1705_v55, %s1331_s25 }
  0x80   : > { %578 = vrot.lane.b32.xlu1 %v1723_v9, %s1332_s30 }
  0x82   : > { %570 = vrot.lane.b32.xlu0 %v1710_v56, %s1332_s30 }
  0x84   : > { %580 = vrot.lane.b32.xlu1 %v564_v53, %s1332_s30 }
  0x86   : > { %572 = vrot.lane.b32.xlu0 %v1715_v35, %s1332_s30 }
  0x88   : > { %631 = vrot.lane.b32.xlu1 %v1762_v50, %s1333_s9 }
  0x8a   : > { %623 = vrot.lane.b32.xlu0 %v1734_v57, %s1333_s9  ;;  %v361_v33 = vpop.permute.xlu1 %360 }
  0x8c   : > { %v353_v41 = vpop.permute.xlu0 %352  ;;  %633 = vrot.lane.b32.xlu1 %v1731_v0, %s1333_s9 }
  0x8e   : > { %625 = vrot.lane.b32.xlu0 %v1738_v27, %s1333_s9  ;;  %v363_v1 = vpop.permute.xlu1 %362 }
  0x90   : > { %v1860_v16 = vpop.permute.xlu0 %354  ;;  %666 = vrot.lane.b32.xlu1 %v1767_v60, %s1334_s12 }
  0x92   : > { %658 = vrot.lane.b32.xlu0 %v1747_v23, %s1334_s12  ;;  %v323_v24 = vpop.permute.xlu1 %322 }
  0x93   : > { %v674_v30 = vsel %vm670_vm8, %v1404_v19, %v323_v24 }
  0x94   : > { %v321_v28 = vpop.permute.xlu0 %320  ;;  %668 = vrot.lane.b32.xlu1 %v1744_v46, %s1334_s12  ;;  %v691_v42 = vsel %vm687_vm10, %v674_v30, %v1860_v16 }
  0x95   : > { %v672_v29 = vsel %vm670_vm8, %v1398_v15, %v321_v28 }
  0x96   : > { %660 = vrot.lane.b32.xlu0 %v1752_v43, %s1334_s12  ;;  %v331_v0 = vpop.permute.xlu1 %330  ;;  %v689_v20 = vsel %vm687_vm10, %v672_v29, %v353_v41 }
  0x97   : > { %v682_v36 = vsel %vm670_vm8, %v1386_v6, %v331_v0 }
  0x98   : > { %v329_v62 = vpop.permute.xlu0 %328  ;;  %v699_v3 = vsel %vm687_vm10, %v682_v36, %v363_v1 }
  0x99   : > { %v680_v43 = vsel %vm670_vm8, %v1384_v5, %v329_v62 }
  0x9a   : > { %v461_v63 = vpop.permute.xlu1 %460  ;;  %v697_v54 = vsel %vm687_vm10, %v680_v43, %v361_v33 }
  0x9b   : > { %v714_v38 = vsel %vm704_vm9, %v697_v54, %v461_v63 }
  0x9c   : > { %v453_v18 = vpop.permute.xlu0 %452 }
  0x9d   : > { %v706_v5 = vsel %vm704_vm9, %v689_v20, %v453_v18 }
  0x9e   : > { %v463_v53 = vpop.permute.xlu1 %462 }
  0x9f   : > { %v716_v48 = vsel %vm704_vm9, %v699_v3, %v463_v53 }
  0xa0   : > { %v455_v55 = vpop.permute.xlu0 %454 }
  0xa1   : > { %v708_v19 = vsel %vm704_vm9, %v691_v42, %v455_v55 }
  0xa2   : > { %v493_v56 = vpop.permute.xlu1 %492 }
  0xa3   : > { %v731_v47 = vsel %vm721_vm11, %v714_v38, %v493_v56 }
  0xa4   : > { %v485_v35 = vpop.permute.xlu0 %484 }
  0xa5   : > { %v723_v61 = vsel %vm721_vm11, %v706_v5, %v485_v35 }
  0xa6   : > { %v495_v9 = vpop.permute.xlu1 %494 }
  0xa7   : > { %v733_v4 = vsel %vm721_vm11, %v716_v48, %v495_v9 }
  0xa8   : > { %v487_v57 = vpop.permute.xlu0 %486 }
  0xa9   : > { %v725_v58 = vsel %vm721_vm11, %v708_v19, %v487_v57 }
  0xaa   : > { %v541_v27 = vpop.permute.xlu1 %540 }
  0xab   : > { %v748_v14 = vsel %vm738_vm12, %v731_v47, %v541_v27 }
  0xac   : > { %v533_v23 = vpop.permute.xlu0 %532 }
  0xad   : > { %v740_v39 = vsel %vm738_vm12, %v723_v61, %v533_v23 }
  0xae   : > { %v543_v50 = vpop.permute.xlu1 %542 }
  0xaf   : > { %v750_v45 = vsel %vm738_vm12, %v733_v4, %v543_v50 }
  0xb0   : > { %v535_v60 = vpop.permute.xlu0 %534 }
  0xb1   : > { %v742_v26 = vsel %vm738_vm12, %v725_v58, %v535_v60 }
  0xb2   : > { %v575_v11 = vpop.permute.xlu1 %574 }
  0xb3   : > { %v765_v44 = vsel %vm755_vm13, %v748_v14, %v575_v11 }
  0xb4   : > { %v567_v8 = vpop.permute.xlu0 %566 }
  0xb5   : > { %v757_v13 = vsel %vm755_vm13, %v740_v39, %v567_v8 }
  0xb6   : > { %v577_v46 = vpop.permute.xlu1 %576 }
  0xb7   : > { %v767_v21 = vsel %vm755_vm13, %v750_v45, %v577_v46 }
  0xb8   : > { %v569_v2 = vpop.permute.xlu0 %568 }
  0xb9   : > { %v759_v41 = vsel %vm755_vm13, %v742_v26, %v569_v2 }
  0xba   : > { %v628_v52 = vpop.permute.xlu1 %627 }
  0xbb   : > { %v782_v7 = vsel %vm772_vm14, %v765_v44, %v628_v52 }
  0xbc   : > { %v620_v34 = vpop.permute.xlu0 %619 }
  0xbd   : > { %v774_v49 = vsel %vm772_vm14, %v757_v13, %v620_v34 }
  0xbe   : > { %v630_v22 = vpop.permute.xlu1 %629 }
  0xbf   : > { %v784_v51 = vsel %vm772_vm14, %v767_v21, %v630_v22 }
  0xc0   : > { %v622_v15 = vpop.permute.xlu0 %621 }
  0xc1   : > { %v776_v16 = vsel %vm772_vm14, %v759_v41, %v622_v15 }
  0xc2   : > { %v663_v12 = vpop.permute.xlu1 %662 }
  0xc3   : > { %v799_v59 = vsel %vm789_vm15, %v782_v7, %v663_v12 }
  0xc4   : > { %v655_v10 = vpop.permute.xlu0 %654  ;;  %1258 = vmatprep.mubr.msk.bf16.mxu1 %vm842_vm0, %v799_v59 }
  0xc5   : > { %v791_v6 = vsel %vm789_vm15, %v774_v49, %v655_v10 }
  0xc6   : > { %1250 = vmatprep.mubr.msk.bf16.mxu0 %vm842_vm0, %v791_v6  ;;  %v333_v17 = vpop.permute.xlu1 %332 }
  0xc7   : > { %v684_v38 = vsel %vm670_vm8, %v1414_v25, %v333_v17 }
  0xc8   : > { %v325_v40 = vpop.permute.xlu0 %324 }
  0xc9   : > { %v676_v47 = vsel %vm670_vm8, %v1428_v32, %v325_v40 }
  0xca   : > { %v665_v33 = vpop.permute.xlu1 %664 }
  0xcb   : > { %v801_v1 = vsel %vm789_vm15, %v784_v51, %v665_v33 }
  0xcc   : > { %v657_v24 = vpop.permute.xlu0 %656  ;;  %1259 = vmatmul.mubr.msk.bf16.vlgmr.msra.gmra.mrb[0].mxu1 %vm842_vm0, %v801_v1 }
  0xcd   : > { %v793_v28 = vsel %vm789_vm15, %v776_v16, %v657_v24  ;;  %v1954_v24 = vld [vmem:[%s2038_s2] ss:$0 sm:$0xff] }
  0xce   : > { %1251 = vmatmul.mubr.msk.bf16.vlgmr.msra.gmra.mrb[0].mxu0 %vm842_vm0, %v793_v28  ;;  %v335_v0 = vpop.permute.xlu1 %334  ;;  %v1959_v28 = vld [vmem:[%s2039_s3] ss:$0 sm:$0xff] }
  0xcf   : > { %v686_v44 = vsel %vm670_vm8, %v1610_v31, %v335_v0 }
  0xd0   : > { %v327_v62 = vpop.permute.xlu0 %326 }
  0xd1   : > { %v678_v13 = vsel %vm670_vm8, %v1613_v37, %v327_v62 }
  0xd2   : > { %v365_v63 = vpop.permute.xlu1 %364 }
  0xd3   : > { %v701_v20 = vsel %vm687_vm10, %v684_v38, %v365_v63 }
  0xd4   : > { %v357_v18 = vpop.permute.xlu0 %356 }
  0xd5   : > { %v693_v15 = vsel %vm687_vm10, %v676_v47, %v357_v18 }
  0xd6   : > { %v367_v53 = vpop.permute.xlu1 %366 }
  0xd7   : > { %v703_v7 = vsel %vm687_vm10, %v686_v44, %v367_v53 }
  0xd8   : > { %v359_v55 = vpop.permute.xlu0 %358 }
  0xd9   : > { %v695_v10 = vsel %vm687_vm10, %v678_v13, %v359_v55 }
  0xda   : > { %v465_v56 = vpop.permute.xlu1 %464 }
  0xdb   : > { %v718_v5 = vsel %vm704_vm9, %v701_v20, %v465_v56 }
  0xdc   : > { %v457_v35 = vpop.permute.xlu0 %456 }
  0xdd   : > { %v710_v36 = vsel %vm704_vm9, %v693_v15, %v457_v35 }
  0xde   : > { %v467_v9 = vpop.permute.xlu1 %466 }
  0xdf   : > { %v720_v59 = vsel %vm704_vm9, %v703_v7, %v467_v9 }
  0xe0   : > { %v459_v57 = vpop.permute.xlu0 %458 }
  0xe1   : > { %v712_v17 = vsel %vm704_vm9, %v695_v10, %v459_v57 }
  0xe2   : > { %v497_v27 = vpop.permute.xlu1 %496 }
  0xe3   : > { %v735_v61 = vsel %vm721_vm11, %v718_v5, %v497_v27 }
  0xe4   : > { %v489_v23 = vpop.permute.xlu0 %488 }
  0xe5   : > { %v727_v12 = vsel %vm721_vm11, %v710_v36, %v489_v23 }
  0xe6   : > { %v499_v50 = vpop.permute.xlu1 %498 }
  0xe7   : > { %v737_v3 = vsel %vm721_vm11, %v720_v59, %v499_v50 }
  0xe8   : > { %v491_v60 = vpop.permute.xlu0 %490 }
  0xe9   : > { %v729_v19 = vsel %vm721_vm11, %v712_v17, %v491_v60 }
  0xea   : > { %v545_v11 = vpop.permute.xlu1 %544 }
  0xeb   : > { %v752_v25 = vsel %vm738_vm12, %v735_v61, %v545_v11 }
  0xec   : > { %v537_v8 = vpop.permute.xlu0 %536 }
  0xed   : > { %v744_v30 = vsel %vm738_vm12, %v727_v12, %v537_v8 }
  0xee   : > { %v547_v46 = vpop.permute.xlu1 %546 }
  0xef   : > { %v754_v42 = vsel %vm738_vm12, %v737_v3, %v547_v46 }
  0xf0   : > { %v539_v2 = vpop.permute.xlu0 %538 }
  0xf1   : > { %v746_v58 = vsel %vm738_vm12, %v729_v19, %v539_v2 }
  0xf2   : > { %v579_v43 = vpop.permute.xlu1 %578 }
  0xf3   : > { %v769_v32 = vsel %vm755_vm13, %v752_v25, %v579_v43 }
  0xf4   : > { %v571_v52 = vpop.permute.xlu0 %570 }
  0xf5   : > { %v761_v6 = vsel %vm755_vm13, %v744_v30, %v571_v52 }
  0xf6   : > { %v581_v29 = vpop.permute.xlu1 %580 }
  0xf7   : > { %v771_v45 = vsel %vm755_vm13, %v754_v42, %v581_v29 }
  0xf8   : > { %v573_v34 = vpop.permute.xlu0 %572 }
  0xf9   : > { %v763_v51 = vsel %vm755_vm13, %v746_v58, %v573_v34 }
  0xfa   : > { %v632_v54 = vpop.permute.xlu1 %631 }
  0xfb   : > { %v786_v31 = vsel %vm772_vm14, %v769_v32, %v632_v54 }
  0xfc   : > { %v624_v22 = vpop.permute.xlu0 %623 }
  0xfd   : > { %v778_v37 = vsel %vm772_vm14, %v761_v6, %v624_v22 }
  0xfe   : > { %v634_v14 = vpop.permute.xlu1 %633 }
  0xff   : > { %v788_v21 = vsel %vm772_vm14, %v771_v45, %v634_v14 }
 0x100   : > { %v626_v39 = vpop.permute.xlu0 %625 }
 0x101   : > { %v780_v41 = vsel %vm772_vm14, %v763_v51, %v626_v39 }
 0x102   : > { %v667_v49 = vpop.permute.xlu1 %666 }
 0x103   : > { %v803_v48 = vsel %vm789_vm15, %v786_v31, %v667_v49 }
 0x104   : > { %v659_v4 = vpop.permute.xlu0 %658  ;;  %1262 = vmatprep.mubr.msk.bf16.mxu1 %vm842_vm0, %v803_v48 }
 0x105   : > { %v795_v40 = vsel %vm789_vm15, %v778_v37, %v659_v4 }
 0x106   : > { %1254 = vmatprep.mubr.msk.bf16.mxu0 %vm842_vm0, %v795_v40  ;;  %v669_v26 = vpop.permute.xlu1 %668 }
 0x107   : > { %v805_v33 = vsel %vm789_vm15, %v788_v21, %v669_v26 }
 0x108   : > { %v661_v1 = vpop.permute.xlu0 %660  ;;  %1263 = vmatmul.mubr.msk.bf16.gmra.mrb[4].mxu1 %vm842_vm0, %v805_v33 }
 0x109   : > { %v797_v16 = vsel %vm789_vm15, %v780_v41, %v661_v1  ;;  %v1097_v41 = vld [vmem:[%s1976_s21 + $0x38] sm:$0x7] }
 0x10a   : > { %1255 = vmatmul.mubr.msk.bf16.gmra.mrb[4].mxu0 %vm842_vm0, %v797_v16 }
 0x19f   : > { %v1260_v0 = vpop.f32.mrb[0].mxu1 }
 0x1a0   : > { %v976_v62 = vmul.f32 %v1260_v0, %v1954_v24  ;;  %v929_v63 = vpop.f32.mrb[1].mxu1 }
 0x1a1   : > { %v1252_v18 = vpop.f32.mrb[0].mxu0  ;;  %v974_v53 = vmul.f32 %v1954_v24, %v929_v63  ;;  %v1261_v55 = vpop.f32.mrb[2].mxu1 }
 0x1a2   : > { %v968_v56 = vmul.f32 %v1252_v18, %v1954_v24  ;;  %v998_v35 = vadd.f32 %v1959_v28, %v976_v62  ;;  %v897_v9 = vpop.f32.mrb[1].mxu0  ;;  %v977_v57 = vmul.f32 %v1261_v55, %v1954_v24  ;;  %v932_v27 = vpop.f32.mrb[3].mxu1 }
 0x1a3   : > { %v966_v23 = vmul.f32 %v1954_v24, %v897_v9  ;;  %v996_v50 = vadd.f32 %v1959_v28, %v974_v53  ;;  %v1253_v60 = vpop.f32.mrb[2].mxu0  ;;  %v975_v11 = vmul.f32 %v1954_v24, %v932_v27 }
 0x1a4   : > { %v990_v8 = vadd.f32 %v1959_v28, %v968_v56  ;;  %v1013_v46 = vmax.f32 %v998_v35, 0.0  ;;  %v969_v2 = vmul.f32 %v1253_v60, %v1954_v24  ;;  %v999_v43 = vadd.f32 %v1959_v28, %v977_v57  ;;  %v900_v52 = vpop.f32.mrb[3].mxu0 }
 0x1a5   : > { %v988_v29 = vadd.f32 %v1959_v28, %v966_v23  ;;  %v1011_v34 = vmax.f32 %v996_v50, 0.0  ;;  %v967_v54 = vmul.f32 %v1954_v24, %v900_v52  ;;  %v997_v38 = vadd.f32 %v1959_v28, %v975_v11 }
 0x1a6   : > { %v1005_v22 = vmax.f32 %v990_v8, 0.0  ;;  %v1222_v20 = vpack.c.bf16 %v1013_v46, %v1013_v46  ;;  %v991_v47 = vadd.f32 %v1959_v28, %v969_v2  ;;  %v1014_v5 = vmax.f32 %v999_v43, 0.0 }
 0x1a7   : > { %v1003_v14 = vmax.f32 %v988_v29, 0.0  ;;  %v1220_v15 = vpack.c.bf16 %v1011_v34, %v1011_v34  ;;  %v989_v61 = vadd.f32 %v1959_v28, %v967_v54  ;;  %v1012_v44 = vmax.f32 %v997_v38, 0.0 }
 0x1a8   : > { %v1214_v36 = vpack.c.bf16 %v1005_v22, %v1005_v22  ;;  %1090 = vst.msk [vmem:[%s1976_s21 + $0x28] sm:$0xf] %vm1079_vm1, %v1222_v20  ;;  %v1006_v25 = vmax.f32 %v991_v47, 0.0  ;;  %v1223_v39 = vpack.c.bf16 %v1014_v5, %v1014_v5 }
 0x1a9   : > { %v1212_v7 = vpack.c.bf16 %v1003_v14, %v1003_v14  ;;  %1088 = vst.msk [vmem:[%s1976_s21 + $0x20] sm:$0xf] %vm1079_vm1, %v1220_v15  ;;  %v1004_v12 = vmax.f32 %v989_v61, 0.0  ;;  %v1221_v32 = vpack.c.bf16 %v1012_v44, %v1012_v44 }
 0x1aa   : > { %1082 = vst.msk [vmem:[%s1976_s21 + $0x8] sm:$0xf] %vm1079_vm1, %v1214_v36  ;;  %v1215_v13 = vpack.c.bf16 %v1006_v25, %v1006_v25  ;;  %1091 = vst.msk [vmem:[%s1976_s21 + $0x2c] sm:$0xf] %vm1079_vm1, %v1223_v39 }
 0x1ab   : > { %1080 = vst.msk [vmem:[%s1976_s21] sm:$0xf] %vm1079_vm1, %v1212_v7  ;;  %v1213_v59 = vpack.c.bf16 %v1004_v12, %v1004_v12  ;;  %1089 = vst.msk [vmem:[%s1976_s21 + $0x24] sm:$0xf] %vm1079_vm1, %v1221_v32 }
 0x1ac   : > { %1083 = vst.msk [vmem:[%s1976_s21 + $0xc] sm:$0xf] %vm1079_vm1, %v1215_v13 }
 0x1ad   : > { %1081 = vst.msk [vmem:[%s1976_s21 + $0x4] sm:$0xf] %vm1079_vm1, %v1213_v59 }
 0x1db   : > { %v1264_v30 = vpop.f32.mrb[4].mxu1 }
 0x1dc   : > { %v980_v31 = vmul.f32 %v1264_v30, %v1954_v24  ;;  %v945_v49 = vpop.f32.mrb[5].mxu1 }
 0x1dd   : > { %v1256_v10 = vpop.f32.mrb[4].mxu0  ;;  %v978_v3 = vmul.f32 %v1954_v24, %v945_v49  ;;  %v1265_v6 = vpop.f32.mrb[6].mxu1 }
 0x1de   : > { %v972_v48 = vmul.f32 %v1256_v10, %v1954_v24  ;;  %v1002_v17 = vadd.f32 %v1959_v28, %v980_v31  ;;  %v913_v42 = vpop.f32.mrb[5].mxu0  ;;  %v948_v37 = vpop.f32.mrb[7].mxu1 }
 0x1df   : > { %v970_v4 = vmul.f32 %v1954_v24, %v913_v42  ;;  %v1000_v19 = vadd.f32 %v1959_v28, %v978_v3  ;;  %v1257_v45 = vpop.f32.mrb[6].mxu0  ;;  %v979_v40 = vmul.f32 %v1954_v24, %v948_v37 }
 0x1e0   : > { %v994_v58 = vadd.f32 %v1959_v28, %v972_v48  ;;  %v1017_v21 = vmax.f32 %v1002_v17, 0.0  ;;  %v973_v26 = vmul.f32 %v1257_v45, %v1954_v24  ;;  %v916_v51 = vpop.f32.mrb[7].mxu0 }
 0x1e1   : > { %v992_v1 = vadd.f32 %v1959_v28, %v970_v4  ;;  %v1015_v16 = vmax.f32 %v1000_v19, 0.0  ;;  %v971_v0 = vmul.f32 %v1954_v24, %v916_v51  ;;  %v1001_v62 = vadd.f32 %v1959_v28, %v979_v40 }
 0x1e2   : > { %v1009_v63 = vmax.f32 %v994_v58, 0.0  ;;  %v1226_v18 = vpack.c.bf16 %v1017_v21, %v1017_v21  ;;  %v995_v53 = vadd.f32 %v1959_v28, %v973_v26 }
 0x1e3   : > { %v1007_v55 = vmax.f32 %v992_v1, 0.0  ;;  %v1224_v56 = vpack.c.bf16 %v1015_v16, %v1015_v16  ;;  %v993_v35 = vadd.f32 %v1959_v28, %v971_v0  ;;  %v1016_v9 = vmax.f32 %v1001_v62, 0.0 }
 0x1e4   : > { %v1218_v57 = vpack.c.bf16 %v1009_v63, %v1009_v63  ;;  %v1098_v24 = vsel %vm2008_vm4, %v1226_v18, %v1097_v41  ;;  %v1010_v27 = vmax.f32 %v995_v53, 0.0 }
 0x1e5   : > { %1099 = vst [vmem:[%s1976_s21 + $0x38] sm:$0x7] %v1098_v24  ;;  %v1216_v23 = vpack.c.bf16 %v1007_v55, %v1007_v55  ;;  %1092 = vst.msk [vmem:[%s1976_s21 + $0x30] sm:$0xf] %vm1079_vm1, %v1224_v56  ;;  %v1008_v50 = vmax.f32 %v993_v35, 0.0  ;;  %v1225_v60 = vpack.c.bf16 %v1016_v9, %v1016_v9 }
 0x1e6   : > { %1086 = vst.msk [vmem:[%s1976_s21 + $0x18] sm:$0xf] %vm1079_vm1, %v1218_v57  ;;  %v1219_v11 = vpack.c.bf16 %v1010_v27, %v1010_v27 }
 0x1e7   : > { %1084 = vst.msk [vmem:[%s1976_s21 + $0x10] sm:$0xf] %vm1079_vm1, %v1216_v23  ;;  %v1217_v8 = vpack.c.bf16 %v1008_v50, %v1008_v50  ;;  %1093 = vst.msk [vmem:[%s1976_s21 + $0x34] sm:$0xf] %vm1079_vm1, %v1225_v60 }
 0x1e8   : > { %1087 = vst.msk [vmem:[%s1976_s21 + $0x1c] sm:$0xf] %vm1079_vm1, %v1219_v11 }
 0x1e9   : > { %1085 = vst.msk [vmem:[%s1976_s21 + $0x14] sm:$0xf] %vm1079_vm1, %v1217_v8 }
 0x1ea PF: > { %s14_s15 = sadd.s32 1, %s1325_s15  }
 0x1eb   : > { %p11_p4 = scmp.ge.s32.totalorder %s14_s15, 4  }
 0x1ed   :  { %13 = sbr.rel (!%p11_p4) target bundleno = 1 (0x1), region = 66 }

</bundles_post_ra>
